<compile_context>
chip_gen: v7x
topology: tpu7x:2x2x1
jax: 0.10.0
libtpu: 0.0.40
codegen_flags: <defaults>
</compile_context>

<pallas_src>
import math
import numpy as np

import jax
import jax.numpy as jnp
from jax.experimental import pallas as pl
from jax.experimental.pallas import tpu as pltpu


def _cdiv(a, b):
    return -(-a // b)


def _build_tables(n_rows, orig_ch, channels):
    """Per-element (n_rows, 128) f32 tables for the flattened lane-dense layout.

    Flat element f = p*orig_ch + j (p = position, j = output column) lives at
    (row, lane) = (f // 128, f % 128).  For a tile starting at position
    pos_base the angle is
        angle = (pos_base + p_local) * inv_freq[j//2] + phase[j]
              = pos_base * A + B
    with A = inv_freq[j//2], B = p_local*inv_freq[j//2] + phase[j] and
    phase[j] = (j % 2) * pi/2  (sin(x + pi/2) == cos(x)).
    """
    f = np.arange(n_rows * 128, dtype=np.int64)
    pos_local = (f // orig_ch).astype(np.float64)
    col = f % orig_ch
    k2 = (col // 2) * 2                      # == arange(0, channels, 2)[j//2]
    inv_freq = np.exp(-np.log(10000.0) * k2.astype(np.float64) / float(channels))
    phase = (col % 2).astype(np.float64) * (np.pi / 2.0)
    a = inv_freq
    b = pos_local * inv_freq + phase
    return (a.reshape(n_rows, 128).astype(np.float32),
            b.reshape(n_rows, 128).astype(np.float32))


def _make_kernel(pos_per_tile):
    def kernel(a_ref, b_ref, o_ref):
        # First position covered by this tile.  Exact because (when gridded)
        # the tile height is a multiple of the layout period, so
        # tile_rows*128 % orig_ch == 0.
        pos_base = (pl.program_id(0) * pos_per_tile).astype(jnp.float32)
        angle = pos_base * a_ref[...] + b_ref[...]        # 2 VALU ops / element
        o_ref[...] = jnp.sin(angle).astype(o_ref.dtype)   # 1 EUP op / element
    return kernel


def positional_encoding_1d_sin(tensor, dtype_override=None, *,
                               tile_rows=None, materialize_batch=True,
                               vmem_budget_bytes=12 * 1024 * 1024):
    """JAX/Pallas equivalent of PositionalEncoding1D_sin.forward.

    tensor: (B, L, orig_ch) -- only shape/dtype are used (matches PyTorch).
    Returns (B, L, orig_ch) positional encoding (or (L, orig_ch) if
    materialize_batch=False, so the consumer can fuse the broadcast).
    """
    if tensor.ndim != 3:
        raise RuntimeError("The input tensor has to be 3d!")
    batch, length, orig_ch = tensor.shape
    out_dtype = (jnp.dtype(dtype_override) if dtype_override is not None
                 else jnp.dtype(tensor.dtype))
    channels = int(math.ceil(orig_ch / 2) * 2)

    total = length * orig_ch
    n_rows = _cdiv(total, 128)                    # flat lane-dense rows of 128

    itemsize = out_dtype.itemsize
    sub_mult = {4: 8, 2: 16, 1: 32}.get(itemsize, 8)   # packed-sublane multiple
    period = orig_ch // math.gcd(orig_ch, 128)          # rows per exact pos period
    tr_unit = (period * sub_mult) // math.gcd(period, sub_mult)   # lcm

    # Per flat row of 128 lanes: 2 output buffers + 2 double-buffered f32 tables.
    bytes_per_row = 2 * 128 * itemsize + 2 * 2 * 128 * 4
    cap = max(tr_unit, (vmem_budget_bytes // bytes_per_row) // tr_unit * tr_unit)
    if tile_rows is not None:                      # manual override (tests/tuning)
        cap = max(tr_unit, (int(tile_rows) // tr_unit) * tr_unit)

    if n_rows <= cap:
        tr, grid_n = n_rows, 1                     # single full-extent block
    else:
        tr, grid_n = cap, _cdiv(n_rows, cap)       # tr % 8 == 0 and tr % period == 0
    pos_per_tile = (tr * 128) // orig_ch if grid_n > 1 else 0

    a_tbl, b_tbl = _build_tables(tr, orig_ch, channels)

    out_flat = pl.pallas_call(
        _make_kernel(pos_per_tile),
        out_shape=jax.ShapeDtypeStruct((n_rows, 128), out_dtype),
        grid_spec=pltpu.PrefetchScalarGridSpec(
            num_scalar_prefetch=0,
            grid=(grid_n,),
            in_specs=[
                pl.BlockSpec((tr, 128), lambda i: (0, 0)),   # A (fetched once)
                pl.BlockSpec((tr, 128), lambda i: (0, 0)),   # B (fetched once)
            ],
            out_specs=pl.BlockSpec((tr, 128), lambda i: (i, 0)),
        ),
        compiler_params=pltpu.CompilerParams(
            dimension_semantics=("parallel",)),
    )(jnp.asarray(a_tbl), jnp.asarray(b_tbl))

    # Layout plumbing back to (L, orig_ch); slice drops the flat padding tail.
    emb = out_flat.reshape(-1)[:total].reshape(length, orig_ch)
    if not materialize_batch:
        return emb
    # emb[None, :, :orig_ch].repeat(B, 1, 1) (module semantics). Note: across a
    # jit output boundary XLA materializes this (B, L, C) array.
    return jnp.broadcast_to(emb[None, :, :], (batch, length, orig_ch))


def _reference(tensor, dtype_override=None):
    """Pure-numpy reference (mirrors the f32 torch computation)."""
    B, L, orig_ch = tensor.shape
    out_dtype = dtype_override if dtype_override is not None else tensor.dtype
    channels = int(math.ceil(orig_ch / 2) * 2)
    inv_freq = 1.0 / (10000.0 ** (np.arange(0, channels, 2, dtype=np.float32)
                                  / np.float32(channels)))
    pos = np.arange(L, dtype=np.float32)
    sin_inp = np.einsum("i,j->ij", pos, inv_freq)                  # (L, channels//2)
    emb = np.stack((np.sin(sin_inp), np.cos(sin_inp)), axis=-1).reshape(L, channels)
    out = np.broadcast_to(emb[None, :, :orig_ch], (B, L, orig_ch))
    return jnp.asarray(out, dtype=out_dtype)


if __name__ == "__main__":
    key = jax.random.PRNGKey(0)

    # 1) Main shape: (B, L, C) = (2, 16, 32), f32.
    x = jax.random.normal(key, (2, 16, 32), dtype=jnp.float32)
    out = jax.block_until_ready(positional_encoding_1d_sin(x))
    assert out.shape == (2, 16, 32), out.shape
    assert out.dtype == x.dtype, out.dtype
    np.testing.assert_allclose(np.asarray(out), np.asarray(_reference(x)),
                               rtol=1e-5, atol=1e-5)

    # 2) Odd channel count (channels padding + ragged flat tail).
    x2 = jax.random.normal(key, (3, 10, 7), dtype=jnp.float32)
    out2 = jax.block_until_ready(positional_encoding_1d_sin(x2))
    assert out2.shape == (3, 10, 7), out2.shape
    np.testing.assert_allclose(np.asarray(out2), np.asarray(_reference(x2)),
                               rtol=1e-5, atol=1e-5)

    # 3) Multi-tile grid path (forced small tile): partial last block + pos_base.
    x3 = jax.random.normal(key, (1, 250, 32), dtype=jnp.float32)
    out3 = jax.block_until_ready(positional_encoding_1d_sin(x3, tile_rows=16))
    np.testing.assert_allclose(np.asarray(out3), np.asarray(_reference(x3)),
                               rtol=2e-4, atol=2e-4)

    # 4) Odd-C multi-tile grid path (period-aligned 56-row tiles, partial block).
    x4 = jax.random.normal(key, (1, 1152, 7), dtype=jnp.float32)
    out4 = jax.block_until_ready(positional_encoding_1d_sin(x4, tile_rows=56))
    np.testing.assert_allclose(np.asarray(out4), np.asarray(_reference(x4)),
                               rtol=5e-4, atol=5e-4)

    # 5) bf16 dtype_override (halves HBM store bytes).
    out5 = jax.block_until_ready(
        positional_encoding_1d_sin(x, dtype_override=jnp.bfloat16))
    assert out5.dtype == jnp.bfloat16, out5.dtype
    np.testing.assert_allclose(np.asarray(out5.astype(jnp.float32)),
                               np.asarray(_reference(x, jnp.float32)),
                               rtol=2e-2, atol=2e-2)

    print("KERNEL_OK")
</pallas_src>

<mosaic_0001>
module attributes {stable_mosaic.version = 11 : i64} {
  func.func @kernel(%arg0: i32, %arg1: memref<4x128xf32, #tpu.memory_space<vmem>>, %arg2: memref<4x128xf32, #tpu.memory_space<vmem>>, %arg3: memref<4x128xf32, #tpu.memory_space<vmem>>) attributes {dimension_semantics = [#tpu.dimension_semantics<parallel>], iteration_bounds = array<i64: 1>, scalar_prefetch = 0 : i64, scratch_operands = 0 : i64, tpu.core_type = #tpu.core_type<tc>, window_params = [{pipeline_mode = #tpu.pipeline_mode<synchronous>, transform_indices = @transform_0, window_bounds = array<i64: 4, 128>}, {pipeline_mode = #tpu.pipeline_mode<synchronous>, transform_indices = @transform_1, window_bounds = array<i64: 4, 128>}, {transform_indices = @transform_2, window_bounds = array<i64: 4, 128>}]} {
    %c0_i32 = arith.constant 0 : i32
    %0 = arith.muli %arg0, %c0_i32 : i32
    %1 = arith.sitofp %0 : i32 to f32
    %c0 = arith.constant 0 : index
    %c0_0 = arith.constant 0 : index
    %2 = vector.load %arg1[%c0, %c0_0] : memref<4x128xf32, #tpu.memory_space<vmem>>, vector<4x128xf32>
    %3 = vector.broadcast %1 : f32 to vector<4x128xf32>
    %4 = arith.mulf %3, %2 : vector<4x128xf32>
    %c0_1 = arith.constant 0 : index
    %c0_2 = arith.constant 0 : index
    %5 = vector.load %arg2[%c0_1, %c0_2] : memref<4x128xf32, #tpu.memory_space<vmem>>, vector<4x128xf32>
    %6 = arith.addf %4, %5 : vector<4x128xf32>
    %7 = math.sin %6 : vector<4x128xf32>
    %c0_3 = arith.constant 0 : index
    %c0_4 = arith.constant 0 : index
    %8 = vector.load %arg3[%c0_3, %c0_4] : memref<4x128xf32, #tpu.memory_space<vmem>>, vector<4x128xf32>
    tpu.vector_store %arg3[%c0_3, %c0_4], %7 {strides = array<i32>} : memref<4x128xf32, #tpu.memory_space<vmem>>, vector<4x128xf32>,
    return
  }
  func.func @transform_0(%arg0: i32) -> (i32, i32) {
    %c0_i32 = arith.constant 0 : i32
    %c0_i32_0 = arith.constant 0 : i32
    %c0_i32_1 = arith.constant 0 : i32
    return %c0_i32, %c0_i32_0 : i32, i32
  }
  func.func @transform_1(%arg0: i32) -> (i32, i32) {
    %c0_i32 = arith.constant 0 : i32
    %c0_i32_0 = arith.constant 0 : i32
    %c0_i32_1 = arith.constant 0 : i32
    return %c0_i32, %c0_i32_0 : i32, i32
  }
  func.func @transform_2(%arg0: i32) -> (i32, i32) {
    %c0_i32 = arith.constant 0 : i32
    %c0_i32_0 = arith.constant 0 : i32
    return %arg0, %c0_i32 : i32, i32
  }
}

</mosaic_0001>

<bundles_post_ra>
// kernel: tpu_custom_call.1
= control target key start
LH: loop header
LB: loop body
LE: loop exit
PB: predicated region body
PF: predicated region fallthrough
CT: control target
= control target key end

     0   :  { %7 = vsyncpa [#allocation3], 0  ;;  %s335_s0 = inlined_call_operand.hbm [shape: f32[4,128], index: 0, kind: input, shape index: {}]   ;;  %s336_s1 = inlined_call_operand.hbm [shape: f32[4,128], index: 1, kind: input, shape index: {}]   ;;  %s337_s2 = inlined_call_operand.hbm [shape: f32[4,128], index: 2, kind: output, shape index: {}]  }
   0x1   :  { %8 = vsyncpa [#allocation6], 0 }
   0x2   :  { %9 = vsyncpa [#allocation4], 0  ;;  %s254_s9 = smov [#allocation2]   ;;  %s255_s11 = smov [#allocation5]  }
   0x3   :  { %s16_s10 = sshll.u32 %s254_s9, 4  ;;  %s26_s12 = sshll.u32 %s255_s11, 4  ;;  %s17_s10 = int_to_ptr.vmem [resolvable:$true] %s16_s10  ;;  %s27_s12 = int_to_ptr.vmem [resolvable:$true] %s26_s12 }
   0x4   :  { %s182_s15 = scalar_lea.hbm %s335_s0, 64 }
   0x5   :  { %p183_p0 = scmp.ne.s32.totalorder %s335_s0, %s182_s15  ;;  %p186_p1 = scmp.lt.u32.totalorder %s182_s15, %s335_s0 }
   0x7   :  { %p188_p2 = pnand %p186_p1, %p183_p0 }
   0x9   :  { %191 = shalt.err (!%p188_p2)
}
   0xa   :  { %s192_s20 = scalar_lea.vmem %s17_s10, 64  ;;  %p197_p4 = scmp.lt.s32.totalorder %s17_s10, %s17_s10 }
   0xb   :  { %p193_p3 = scmp.ne.s32.totalorder %s17_s10, %s192_s20  ;;  %p198_p5 = scmp.lt.s32.totalorder %s192_s20, %s192_s20 }
   0xd   :  { %p199_p6 = por %p198_p5, %p197_p4 }
   0xf   :  { %p200_p7 = pnand %p199_p6, %p193_p3 }
  0x11   :  { %203 = shalt.err (!%p200_p7)
}
  0x12   :  { %19 = dma.hbm_to_vmem [thread:$0]  %s335_s0, 64, %s17_s10, [#allocation3]  }
  0x13   :  { %s204_s25 = scalar_lea.hbm %s336_s1, 64 }
  0x14   :  { %p205_p8 = scmp.ne.s32.totalorder %s336_s1, %s204_s25  ;;  %p208_p9 = scmp.lt.u32.totalorder %s204_s25, %s336_s1 }
  0x16   :  { %p210_p10 = pnand %p208_p9, %p205_p8 }
  0x18   :  { %213 = shalt.err (!%p210_p10)
}
  0x19   :  { %s214_s30 = scalar_lea.vmem %s27_s12, 64  ;;  %p219_p12 = scmp.lt.s32.totalorder %s27_s12, %s27_s12 }
  0x1a   :  { %p215_p11 = scmp.ne.s32.totalorder %s27_s12, %s214_s30  ;;  %p220_p13 = scmp.lt.s32.totalorder %s214_s30, %s214_s30 }
  0x1c   :  { %p221_p0 = por %p220_p13, %p219_p12 }
  0x1e   :  { %p222_p1 = pnand %p221_p0, %p215_p11 }
  0x20   :  { %225 = shalt.err (!%p222_p1)
}
  0x21   :  { %29 = dma.hbm_to_vmem [thread:$0]  %s336_s1, 64, %s27_s12, [#allocation6]  }
  0x22   :  { %248 = dma.done.wait [#allocation3], 64  }
  0x23   :  { %249 = vsyncadd [#allocation3], 4294967232 }
  0x24   :  { %250 = dma.done.wait [#allocation6], 64  }
  0x25   :  { %251 = vsyncadd [#allocation6], 4294967232  ;;  %v36_v0 = vld [vmem:[#allocation2] sm:$0xf]  ;;  %v38_v1 = vld [vmem:[#allocation5] sm:$0xf] }
  0x26   :  { %v37_v2 = vmul.f32 0.0, %v36_v0  ;;  %v256_v15 = vmov 683565275   ;;  %v257_v17 = vmov 2475754826   ;;  %s262_s1 = smov [#allocation7]  }
  0x27   :  { %v258_v19 = vmov 2131351028   ;;  %v259_v21 = vmov 2102212464   ;;  %v260_v23 = vmov 920167782  }
  0x28   :  { %v302_v3 = vadd.f32 %v38_v1, %v37_v2  ;;  %v261_v30 = vmov 1326507024   ;;  %s151_s4 = sshll.u32 %s262_s1, 4  ;;  %s152_s4 = int_to_ptr.vmem [resolvable:$true] %s151_s4 }
  0x29   :  { %s226_s5 = scalar_lea.vmem %s152_s4, 64  ;;  %p231_p3 = scmp.lt.s32.totalorder %s152_s4, %s152_s4 }
  0x2a   :  { %v43_v4 = vand.u32 2139095040, %v302_v3  ;;  %v40_v6 = vand.u32 2147483647, %v302_v3  ;;  %vm42_vm7 = vcmp.lt.s32.totalorder %v302_v3, 0  ;;  %vm132_vm12 = vweird.f32 %v302_v3  ;;  %p227_p2 = scmp.ne.s32.totalorder %s152_s4, %s226_s5  ;;  %p232_p4 = scmp.lt.s32.totalorder %s226_s5, %s226_s5 }
  0x2c   :  { %v44_v5 = vshrl.u32 %v43_v4, 23  ;;  %v47_v9 = vand.u32 8388607, %v40_v6  ;;  %vm41_vm8 = vcmp.le.f32.partialorder %v40_v6, 0.7853982  ;;  %p233_p5 = por %p232_p4, %p231_p3 }
  0x2e   :  { %v161_v7 = vadd.s32 4294967169, %v44_v5  ;;  %v48_v12 = vor.u32 8388608, %v47_v9  ;;  %p234_p6 = pnand %p233_p5, %p227_p2 }
  0x30   :  { %v50_v8 = vadd.s32 1, %v161_v7  ;;  %v88_v32 = vshll.u32 %v48_v12, 8 }
  0x32   :  { %vm51_vm0 = vcmp.gt.s32.totalorder %v50_v8, 0 }
  0x33   :  { %v52_v10 = vsel %vm51_vm0, %v50_v8, 0 }
  0x34   :  { %v54_v11 = vand.u32 31, %v52_v10  ;;  %v53_v13 = vshrl.u32 %v52_v10, 5 }
  0x36   :  { %v55_v14 = vsub.s32 32, %v54_v11  ;;  %v57_v16 = vshll.u32 %v256_v15, %v54_v11  ;;  %v60_v18 = vshll.u32 %v257_v17, %v54_v11  ;;  %v63_v20 = vshll.u32 %v258_v19, %v54_v11 }
  0x37   :  { %v66_v22 = vshll.u32 %v259_v21, %v54_v11  ;;  %v69_v24 = vshll.u32 %v260_v23, %v54_v11  ;;  %vm72_vm1 = vcmp.lt.s32.totalorder %v53_v13, 1  ;;  %vm75_vm2 = vcmp.lt.s32.totalorder %v53_v13, 4 }
  0x38   :  { %v56_v25 = vshrl.u32 %v256_v15, %v55_v14  ;;  %v58_v26 = vshrl.u32 %v257_v17, %v55_v14  ;;  %v61_v27 = vshrl.u32 %v258_v19, %v55_v14  ;;  %v64_v28 = vshrl.u32 %v259_v21, %v55_v14 }
  0x39   :  { %v67_v29 = vshrl.u32 %v260_v23, %v55_v14  ;;  %v70_v31 = vshrl.u32 %v261_v30, %v55_v14  ;;  %vm73_vm3 = vcmp.lt.s32.totalorder %v53_v13, 2  ;;  %vm74_vm4 = vcmp.lt.s32.totalorder %v53_v13, 3 }
  0x3a   :  { %v59_v33 = vor.u32 %v58_v26, %v57_v16  ;;  %v62_v34 = vor.u32 %v61_v27, %v60_v18  ;;  %v65_v35 = vor.u32 %v64_v28, %v63_v20 }
  0x3b   :  { %v68_v36 = vor.u32 %v67_v29, %v66_v22  ;;  %v71_v37 = vor.u32 %v70_v31, %v69_v24 }
  0x3c   :  { %v76_v38 = vsel %vm72_vm1, %v56_v25, %v59_v33  ;;  %v77_v39 = vsel %vm75_vm2, %v65_v35, 2102212464  ;;  %v80_v40 = vsel %vm72_vm1, %v59_v33, %v62_v34  ;;  %v84_v41 = vsel %vm72_vm1, %v62_v34, %v65_v35 }
  0x3d   :  { %v78_v42 = vsel %vm74_vm4, %v62_v34, %v77_v39  ;;  %v81_v43 = vsel %vm75_vm2, %v68_v36, 920167782  ;;  %v85_v44 = vsel %vm75_vm2, %v71_v37, 1326507024 }
  0x3e   :  { %v82_v45 = vsel %vm74_vm4, %v65_v35, %v81_v43  ;;  %v86_v46 = vsel %vm74_vm4, %v68_v36, %v85_v44  ;;  %v79_v47 = vsel %vm73_vm3, %v76_v38, %v78_v42 }
  0x3f   :  { %v83_v48 = vsel %vm73_vm3, %v80_v40, %v82_v45  ;;  %v87_v49 = vsel %vm73_vm3, %v84_v41, %v86_v46  ;;  %v95_v54 = vmul.u32 %v88_v32, %v79_v47 }
  0x40   :  { %v308_v50 = vmul.u32.u64.low %v88_v32, %v87_v49  ;;  %v309_v51 = vmul.u32.u64.high %v88_v32, %v87_v49, %v308_v50  ;;  %v311_v52 = vmul.u32.u64.low %v88_v32, %v83_v48  ;;  %v312_v53 = vmul.u32.u64.high %v88_v32, %v83_v48, %v311_v52 }
  0x42   :  { %vm97_vm5 = vc.u32 %v309_v51, %v311_v52  ;;  %v98_v55 = vadd.s32 1, %v312_v53  ;;  %v96_v2 = vadd.s32 %v311_v52, %v309_v51 }
  0x44   :  { %v99_v56 = vsel %vm97_vm5, %v98_v55, %v312_v53 }
  0x45   :  { %v100_v57 = vadd.s32 %v99_v56, %v95_v54 }
  0x47   :  { %v101_v58 = vadd.s32 536870912, %v100_v57 }
  0x49   :  { %v102_v59 = vshrl.u32 %v101_v58, 30 }
  0x4b   :  { %v103_v60 = vshll.u32 %v102_v59, 30  ;;  %v126_v16 = vsub.s32 4, %v102_v59 }
  0x4d   :  { %v104_v61 = vsub.s32 %v100_v57, %v103_v60  ;;  %v127_v19 = vsel %vm42_vm7, %v126_v16, %v102_v59 }
  0x4e   :  { %v129_v22 = vsel %vm41_vm8, 0, %v127_v19 }
  0x4f   :  { %v106_v62 = vsub.s32 0, %v104_v61  ;;  %v133_v23 = vadd.s32 3, %v129_v22 }
  0x51   :  { %v162_v63 = vmin.u32 %v106_v62, %v104_v61  ;;  %v134_v24 = vand.u32 3, %v133_v23 }
  0x53   :  { %v108_v0 = vclz %v162_v63  ;;  %vm139_vm9 = vcmp.eq.s32.totalorder %v134_v24, 2  ;;  %vm136_vm10 = vcmp.eq.s32.totalorder %v134_v24, 0  ;;  %vm135_vm11 = vcmp.lt.s32.totalorder %v134_v24, 2 }
  0x55   :  { %v163_v1 = vadd.s32 4294967294, %v108_v0 }
  0x57   :  { %vm164_vm6 = vcmp.lt.s32.totalorder %v163_v1, 0 }
  0x58   :  { %v111_v4 = vsel %vm164_vm6, 0, %v163_v1 }
  0x59   :  { %v112_v5 = vsub.s32 32, %v111_v4  ;;  %v113_v7 = vshll.u32 %v104_v61, %v111_v4  ;;  %v116_v8 = vsub.s32 4294967266, %v111_v4 }
  0x5b   :  { %v114_v9 = vshrl.u32 %v96_v2, %v112_v5  ;;  %v117_v10 = vadd.s32 127, %v116_v8 }
  0x5d   :  { %v115_v11 = vor.u32 %v114_v9, %v113_v7  ;;  %v118_v12 = vshll.u32 %v117_v10, 23 }
  0x5f   :  { %v119_v13 = vor.u32 4788187, %v118_v12  ;;  %v122_v14 = vcvt.s32.f32 %v115_v11 }
  0x61   :  { %v120_v15 = vand.u32 2147483647, %v119_v13 }
  0x63   :  { %v123_v17 = vmul.f32 %v122_v14, %v120_v15 }
  0x65   :  { %v124_v18 = vxor.u32 2147483648, %v123_v17 }
  0x67   :  { %v125_v20 = vsel %vm42_vm7, %v124_v18, %v123_v17 }
  0x68   :  { %v128_v21 = vsel %vm41_vm8, %v302_v3, %v125_v20 }
  0x69   :  { %178 = vcosq.f32 %v128_v21 }
  0x6a   :  { %180 = vsinq.f32 %v128_v21 }
  0x73   :  { %v179_v25 = vpop.eup %178 }
  0x74   :  { %v181_v26 = vpop.eup %180  ;;  %v140_v27 = vxor.u32 2147483648, %v179_v25 }
  0x75   :  { %v137_v28 = vxor.u32 2147483648, %v181_v26 }
  0x76   :  { %v141_v6 = vsel %vm139_vm9, %v140_v27, %v181_v26 }
  0x77   :  { %v138_v29 = vsel %vm136_vm10, %v179_v25, %v137_v28 }
  0x78   :  { %v142_v30 = vsel %vm135_vm11, %v138_v29, %v141_v6 }
  0x79   :  { %v143_v31 = vsel %vm132_vm12, nan, %v142_v30 }
  0x7a   :  { %144 = vst [vmem:[#allocation7] sm:$0xf] %v143_v31 }
  0x7b   :  { %237 = shalt.err (!%p234_p6)
}
  0x7c   :  { %s238_s8 = scalar_lea.hbm %s337_s2, 64 }
  0x7d   :  { %p239_p7 = scmp.ne.s32.totalorder %s337_s2, %s238_s8  ;;  %p242_p8 = scmp.lt.u32.totalorder %s238_s8, %s337_s2 }
  0x7f   :  { %p244_p9 = pnand %p242_p8, %p239_p7 }
  0x81   :  { %247 = shalt.err (!%p244_p9)
}
  0x82   :  { %154 = dma.vmem_to_hbm [thread:$0]  %s152_s4, 64, %s337_s2, [#allocation4]  }
  0x83   :  { %252 = dma.done.wait [#allocation4], 64  }
  0x84   :  { %253 = vsyncadd [#allocation4], 4294967232 }
  0x85   :  { %158 = vsyncpa [#allocation3], 1 }
  0x86   :  { %159 = vsyncpa [#allocation6], 1 }
  0x87   :  { %160 = vsyncpa [#allocation4], 1 }

</bundles_post_ra>
